<compile_context>
chip_gen: v7x
topology: tpu7x:2x2x1
jax: 0.10.0
libtpu: 0.0.40
codegen_flags: <defaults>
</compile_context>

<pallas_src>
import numpy as np

import jax
import jax.numpy as jnp
from jax.experimental import pallas as pl
from jax.experimental.pallas import tpu as pltpu


# --------------------------- constant Haar matrices ------------------------- #
def _lane_haar(WB):
    """(WB, WB): right-multiply de-interleaves lane pairs into [sums | diffs]."""
    wh = WB // 2
    m = np.zeros((WB, WB), dtype=np.float32)
    for j in range(wh):
        m[2 * j, j] = 1.0
        m[2 * j + 1, j] = 1.0           # col j        : x[2j] + x[2j+1]
        m[2 * j, wh + j] = 1.0
        m[2 * j + 1, wh + j] = -1.0     # col wh + j   : x[2j] - x[2j+1]
    return m


def _row_haar(TH):
    """(2TH, 2TH): left-multiply combines sublane (row) pairs into [sums ; diffs]."""
    m = np.zeros((2 * TH, 2 * TH), dtype=np.float32)
    for i in range(TH):
        m[i, 2 * i] = 1.0
        m[i, 2 * i + 1] = 1.0           # row i        : r[2i] + r[2i+1]
        m[TH + i, 2 * i] = 1.0
        m[TH + i, 2 * i + 1] = -1.0     # row TH + i   : r[2i] - r[2i+1]
    return m


# ------------------------------- tile pickers ------------------------------- #
def _pick_rows(h, max_tile=128):
    """Row-pair tile TH: divides h and is a multiple of 8 (or the full extent)."""
    if h <= max_tile:
        return h
    for t in range(max_tile, 7, -1):
        if h % t == 0 and t % 8 == 0:
            return t
    return h


def _pick_lanes(W, max_tile=512):
    """Lane tile WB: divides W, multiple of 256 (so WB/2 % 128 == 0), or full W."""
    if W <= max_tile:
        return W
    for t in range(max_tile, 255, -1):
        if W % t == 0 and t % 256 == 0:
            return t
    return W


# ----------------------------- Pallas kernels ------------------------------- #
def _haar_fwd_kernel(x_ref, p_ref, hc_ref, o_ref):
    # x_ref : (2TH, WB)      p_ref : (2TH, 2TH)  (already scaled by 1/4)
    # hc_ref: (WB, WB)       o_ref : (4, TH, WB//2)
    th, wh = o_ref.shape[1], o_ref.shape[2]
    x = x_ref[...].astype(jnp.float32)
    u = jnp.dot(x, hc_ref[...], preferred_element_type=jnp.float32)       # lanes
    v = jnp.dot(p_ref[...], u, preferred_element_type=jnp.float32)        # sublanes
    o_ref[0] = v[:th, :wh].astype(o_ref.dtype)      # (a + b + c + d) / 4
    o_ref[1] = v[:th, wh:].astype(o_ref.dtype)      # (a - b + c - d) / 4
    o_ref[2] = v[th:, :wh].astype(o_ref.dtype)      # (a + b - c - d) / 4
    o_ref[3] = v[th:, wh:].astype(o_ref.dtype)      # (a - b - c + d) / 4


def _haar_rev_kernel(y_ref, pt_ref, hct_ref, o_ref):
    # y_ref : (4, TH, wh)    pt_ref : (2TH, 2TH)   hct_ref: (WB, WB)
    # o_ref : (2TH, WB)
    th, wh = y_ref.shape[1], y_ref.shape[2]
    hct = hct_ref[...]
    pt = pt_ref[...]
    hct_top, hct_bot = hct[:wh, :], hct[wh:, :]
    row_top = (jnp.dot(y_ref[0].astype(jnp.float32), hct_top,
                       preferred_element_type=jnp.float32)
               + jnp.dot(y_ref[1].astype(jnp.float32), hct_bot,
                         preferred_element_type=jnp.float32))
    row_bot = (jnp.dot(y_ref[2].astype(jnp.float32), hct_top,
                       preferred_element_type=jnp.float32)
               + jnp.dot(y_ref[3].astype(jnp.float32), hct_bot,
                         preferred_element_type=jnp.float32))
    x_tile = (jnp.dot(pt[:, :th], row_top, preferred_element_type=jnp.float32)
              + jnp.dot(pt[:, th:], row_bot, preferred_element_type=jnp.float32))
    o_ref[...] = x_tile.astype(o_ref.dtype)


# -------------------------------- wrappers ---------------------------------- #
def haar_downsampling_fwd(x):
    """x: (N, C, H, W)  ->  (N, 4, C, H/2, W/2)   (rev=False path)."""
    N, C, H, W = x.shape
    assert H % 2 == 0 and W % 2 == 0
    h, w = H // 2, W // 2
    TH = _pick_rows(h)
    WB = _pick_lanes(W)
    wh = WB // 2

    p_fwd = jnp.asarray(_row_haar(TH) * 0.25, dtype=jnp.float32)   # /4 folded in
    hc = jnp.asarray(_lane_haar(WB), dtype=jnp.float32)

    grid = (N, C, h // TH, W // WB)
    return pl.pallas_call(
        _haar_fwd_kernel,
        out_shape=jax.ShapeDtypeStruct((N, 4, C, h, w), x.dtype),
        grid=grid,
        in_specs=[
            pl.BlockSpec((None, None, 2 * TH, WB), lambda n, c, t, b: (n, c, t, b)),
            pl.BlockSpec((2 * TH, 2 * TH), lambda n, c, t, b: (0, 0)),
            pl.BlockSpec((WB, WB), lambda n, c, t, b: (0, 0)),
        ],
        out_specs=pl.BlockSpec((None, 4, None, TH, wh),
                               lambda n, c, t, b: (n, 0, c, t, b)),
        compiler_params=pltpu.CompilerParams(
            dimension_semantics=("parallel", "parallel", "parallel", "parallel")),
    )(x, p_fwd, hc)


def haar_downsampling_rev(y):
    """y: (N, 4, C, h, w)  ->  (N, C, 2h, 2w)   (rev=True path, conv_transpose)."""
    N, K, C, h, w = y.shape
    assert K == 4
    H, W = 2 * h, 2 * w
    TH = _pick_rows(h)
    WB = _pick_lanes(W)
    wh = WB // 2

    pt = jnp.asarray(_row_haar(TH).T, dtype=jnp.float32)
    hct = jnp.asarray(_lane_haar(WB).T, dtype=jnp.float32)

    grid = (N, C, h // TH, W // WB)
    return pl.pallas_call(
        _haar_rev_kernel,
        out_shape=jax.ShapeDtypeStruct((N, C, H, W), y.dtype),
        grid=grid,
        in_specs=[
            pl.BlockSpec((None, 4, None, TH, wh), lambda n, c, t, b: (n, 0, c, t, b)),
            pl.BlockSpec((2 * TH, 2 * TH), lambda n, c, t, b: (0, 0)),
            pl.BlockSpec((WB, WB), lambda n, c, t, b: (0, 0)),
        ],
        out_specs=pl.BlockSpec((None, None, 2 * TH, WB),
                               lambda n, c, t, b: (n, c, t, b)),
        compiler_params=pltpu.CompilerParams(
            dimension_semantics=("parallel", "parallel", "parallel", "parallel")),
    )(y, pt, hct)


def haar_downsampling(x, rev=False):
    """Mirror of HaarDownsampling.forward (module's scalar bookkeeping aside)."""
    return haar_downsampling_rev(x) if rev else haar_downsampling_fwd(x)


def haar_jacobian(x_shape, rev=False):
    """Scalar bookkeeping of the module (self.last_jac); no kernel needed."""
    elements = x_shape[1] * x_shape[2] * x_shape[3]
    return elements / 4 * (np.log(16.0) if rev else np.log(1 / 16.0))


# ------------------------------- references --------------------------------- #
def _haar_fwd_reference(x):
    a = x[:, :, 0::2, 0::2]
    b = x[:, :, 0::2, 1::2]
    c = x[:, :, 1::2, 0::2]
    d = x[:, :, 1::2, 1::2]
    k0 = (a + b + c + d) * 0.25
    k1 = (a - b + c - d) * 0.25
    k2 = (a + b - c - d) * 0.25
    k3 = (a - b - c + d) * 0.25
    return jnp.stack([k0, k1, k2, k3], axis=1)          # (N, 4, C, h, w)


def _haar_rev_reference(y):
    N, _, C, h, w = y.shape
    k0, k1, k2, k3 = y[:, 0], y[:, 1], y[:, 2], y[:, 3]
    a = k0 + k1 + k2 + k3
    b = k0 - k1 + k2 - k3
    c = k0 + k1 - k2 - k3
    d = k0 - k1 - k2 + k3
    top = jnp.stack([a, b], axis=-1)                     # (N, C, h, w, 2) dy=0
    bot = jnp.stack([c, d], axis=-1)                     # dy=1
    full = jnp.stack([top, bot], axis=-3)                # (N, C, h, 2, w, 2)
    return full.reshape(N, C, 2 * h, 2 * w)


# ----------------------------------- main ------------------------------------ #
if __name__ == "__main__":
    key = jax.random.PRNGKey(0)
    x = jax.random.normal(key, (2, 4, 16, 16), dtype=jnp.float32)

    fwd = jax.jit(haar_downsampling_fwd)
    out = jax.block_until_ready(fwd(x))
    assert out.shape == (2, 4, 4, 8, 8), out.shape
    assert bool(jnp.allclose(out, _haar_fwd_reference(x), atol=1e-5, rtol=1e-5))

    rev = jax.jit(haar_downsampling_rev)
    x_rec = jax.block_until_ready(rev(out))
    assert x_rec.shape == x.shape, x_rec.shape
    assert bool(jnp.allclose(x_rec, x, atol=1e-4, rtol=1e-4))   # Haar orthogonality

    # reverse path on an arbitrary input (matches conv_transpose2d semantics)
    y = jax.random.normal(jax.random.PRNGKey(1), (2, 4, 4, 8, 8), dtype=jnp.float32)
    x_up = jax.block_until_ready(rev(y))
    assert bool(jnp.allclose(x_up, _haar_rev_reference(y), atol=1e-4, rtol=1e-4))

    _ = haar_jacobian(x.shape, rev=False)   # scalar bookkeeping only

    print("KERNEL_OK")
</pallas_src>

<mosaic_0001>
module attributes {stable_mosaic.version = 11 : i64} {
  func.func @_haar_fwd_kernel(%arg0: i32, %arg1: i32, %arg2: i32, %arg3: i32, %arg4: memref<1x1x16x16xf32, #tpu.memory_space<vmem>>, %arg5: memref<16x16xf32, #tpu.memory_space<vmem>>, %arg6: memref<16x16xf32, #tpu.memory_space<vmem>>, %arg7: memref<1x4x1x8x8xf32, #tpu.memory_space<vmem>>) attributes {dimension_semantics = [#tpu.dimension_semantics<parallel>, #tpu.dimension_semantics<parallel>, #tpu.dimension_semantics<parallel>, #tpu.dimension_semantics<parallel>], iteration_bounds = array<i64: 2, 4, 1, 1>, scalar_prefetch = 0 : i64, scratch_operands = 0 : i64, tpu.core_type = #tpu.core_type<tc>, window_params = [{transform_indices = @transform_0, window_bounds = array<i64: 1, 1, 16, 16>}, {pipeline_mode = #tpu.pipeline_mode<synchronous>, transform_indices = @transform_1, window_bounds = array<i64: 16, 16>}, {pipeline_mode = #tpu.pipeline_mode<synchronous>, transform_indices = @transform_2, window_bounds = array<i64: 16, 16>}, {transform_indices = @transform_3, window_bounds = array<i64: 1, 4, 1, 8, 8>}]} {
    %c0 = arith.constant 0 : index
    %c0_0 = arith.constant 0 : index
    %c0_1 = arith.constant 0 : index
    %c0_2 = arith.constant 0 : index
    %0 = vector.load %arg4[%c0, %c0_0, %c0_1, %c0_2] : memref<1x1x16x16xf32, #tpu.memory_space<vmem>>, vector<1x1x16x16xf32>
    %1 = vector.shape_cast %0 : vector<1x1x16x16xf32> to vector<16x16xf32>
    %c0_3 = arith.constant 0 : index
    %c0_4 = arith.constant 0 : index
    %2 = vector.load %arg6[%c0_3, %c0_4] : memref<16x16xf32, #tpu.memory_space<vmem>>, vector<16x16xf32>
    %cst = arith.constant dense<0.000000e+00> : vector<16x16xf32>
    %3 = tpu.matmul %1, %2, %cst {dimension_numbers = #tpu.dot_dimension_numbers<[1], [0], [0], [1], [0, 0, 1, 1], [], []>} : vector<16x16xf32>, vector<16x16xf32>, vector<16x16xf32> -> vector<16x16xf32>
    %c0_5 = arith.constant 0 : index
    %c0_6 = arith.constant 0 : index
    %4 = vector.load %arg5[%c0_5, %c0_6] : memref<16x16xf32, #tpu.memory_space<vmem>>, vector<16x16xf32>
    %cst_7 = arith.constant dense<0.000000e+00> : vector<16x16xf32>
    %5 = tpu.matmul %4, %3, %cst_7 {dimension_numbers = #tpu.dot_dimension_numbers<[1], [0], [0], [1], [0, 0, 1, 1], [], []>} : vector<16x16xf32>, vector<16x16xf32>, vector<16x16xf32> -> vector<16x16xf32>
    %6 = vector.extract_strided_slice %5 {offsets = [0, 0], sizes = [8, 8], strides = [1, 1]} : vector<16x16xf32> to vector<8x8xf32>
    %c0_8 = arith.constant 0 : index
    %c0_9 = arith.constant 0 : index
    %c0_10 = arith.constant 0 : index
    %c0_11 = arith.constant 0 : index
    %c0_12 = arith.constant 0 : index
    %7 = vector.load %arg7[%c0_8, %c0_9, %c0_10, %c0_11, %c0_12] : memref<1x4x1x8x8xf32, #tpu.memory_space<vmem>>, vector<1x1x1x8x8xf32>
    %8 = vector.shape_cast %7 : vector<1x1x1x8x8xf32> to vector<8x8xf32>
    %9 = vector.shape_cast %6 : vector<8x8xf32> to vector<1x1x1x8x8xf32>
    tpu.vector_store %arg7[%c0_8, %c0_9, %c0_10, %c0_11, %c0_12], %9 {strides = array<i32>} : memref<1x4x1x8x8xf32, #tpu.memory_space<vmem>>, vector<1x1x1x8x8xf32>,
    %10 = vector.extract_strided_slice %5 {offsets = [0, 8], sizes = [8, 8], strides = [1, 1]} : vector<16x16xf32> to vector<8x8xf32>
    %c0_13 = arith.constant 0 : index
    %c1 = arith.constant 1 : index
    %c0_14 = arith.constant 0 : index
    %c0_15 = arith.constant 0 : index
    %c0_16 = arith.constant 0 : index
    %11 = vector.load %arg7[%c0_13, %c1, %c0_14, %c0_15, %c0_16] : memref<1x4x1x8x8xf32, #tpu.memory_space<vmem>>, vector<1x1x1x8x8xf32>
    %12 = vector.shape_cast %11 : vector<1x1x1x8x8xf32> to vector<8x8xf32>
    %13 = vector.shape_cast %10 : vector<8x8xf32> to vector<1x1x1x8x8xf32>
    tpu.vector_store %arg7[%c0_13, %c1, %c0_14, %c0_15, %c0_16], %13 {strides = array<i32>} : memref<1x4x1x8x8xf32, #tpu.memory_space<vmem>>, vector<1x1x1x8x8xf32>,
    %14 = vector.extract_strided_slice %5 {offsets = [8, 0], sizes = [8, 8], strides = [1, 1]} : vector<16x16xf32> to vector<8x8xf32>
    %c0_17 = arith.constant 0 : index
    %c2 = arith.constant 2 : index
    %c0_18 = arith.constant 0 : index
    %c0_19 = arith.constant 0 : index
    %c0_20 = arith.constant 0 : index
    %15 = vector.load %arg7[%c0_17, %c2, %c0_18, %c0_19, %c0_20] : memref<1x4x1x8x8xf32, #tpu.memory_space<vmem>>, vector<1x1x1x8x8xf32>
    %16 = vector.shape_cast %15 : vector<1x1x1x8x8xf32> to vector<8x8xf32>
    %17 = vector.shape_cast %14 : vector<8x8xf32> to vector<1x1x1x8x8xf32>
    tpu.vector_store %arg7[%c0_17, %c2, %c0_18, %c0_19, %c0_20], %17 {strides = array<i32>} : memref<1x4x1x8x8xf32, #tpu.memory_space<vmem>>, vector<1x1x1x8x8xf32>,
    %18 = vector.extract_strided_slice %5 {offsets = [8, 8], sizes = [8, 8], strides = [1, 1]} : vector<16x16xf32> to vector<8x8xf32>
    %c0_21 = arith.constant 0 : index
    %c3 = arith.constant 3 : index
    %c0_22 = arith.constant 0 : index
    %c0_23 = arith.constant 0 : index
    %c0_24 = arith.constant 0 : index
    %19 = vector.load %arg7[%c0_21, %c3, %c0_22, %c0_23, %c0_24] : memref<1x4x1x8x8xf32, #tpu.memory_space<vmem>>, vector<1x1x1x8x8xf32>
    %20 = vector.shape_cast %19 : vector<1x1x1x8x8xf32> to vector<8x8xf32>
    %21 = vector.shape_cast %18 : vector<8x8xf32> to vector<1x1x1x8x8xf32>
    tpu.vector_store %arg7[%c0_21, %c3, %c0_22, %c0_23, %c0_24], %21 {strides = array<i32>} : memref<1x4x1x8x8xf32, #tpu.memory_space<vmem>>, vector<1x1x1x8x8xf32>,
    return
  }
  func.func @transform_0(%arg0: i32, %arg1: i32, %arg2: i32, %arg3: i32) -> (i32, i32, i32, i32) {
    %c0_i32 = arith.constant 0 : i32
    return %arg0, %arg1, %arg2, %arg3 : i32, i32, i32, i32
  }
  func.func @transform_1(%arg0: i32, %arg1: i32, %arg2: i32, %arg3: i32) -> (i32, i32) {
    %c0_i32 = arith.constant 0 : i32
    %c0_i32_0 = arith.constant 0 : i32
    %c0_i32_1 = arith.constant 0 : i32
    return %c0_i32, %c0_i32_0 : i32, i32
  }
  func.func @transform_2(%arg0: i32, %arg1: i32, %arg2: i32, %arg3: i32) -> (i32, i32) {
    %c0_i32 = arith.constant 0 : i32
    %c0_i32_0 = arith.constant 0 : i32
    %c0_i32_1 = arith.constant 0 : i32
    return %c0_i32, %c0_i32_0 : i32, i32
  }
  func.func @transform_3(%arg0: i32, %arg1: i32, %arg2: i32, %arg3: i32) -> (i32, i32, i32, i32, i32) {
    %c0_i32 = arith.constant 0 : i32
    %c0_i32_0 = arith.constant 0 : i32
    return %arg0, %c0_i32, %arg1, %arg2, %arg3 : i32, i32, i32, i32, i32
  }
}

</mosaic_0001>

<bundles_post_ra>
// kernel: haar_downsampling_fwd.1
= control target key start
LH: loop header
LB: loop body
LE: loop exit
PB: predicated region body
PF: predicated region fallthrough
CT: control target
= control target key end

     0   :  { %s1259_s0 = inlined_call_operand.hbm [shape: f32[2,4,16,16], index: 0, kind: input, shape index: {}]   ;;  %s1260_s1 = inlined_call_operand.hbm [shape: f32[16,16], index: 1, kind: input, shape index: {}]   ;;  %s1261_s2 = inlined_call_operand.hbm [shape: f32[16,16], index: 2, kind: input, shape index: {}]   ;;  %s1262_s3 = inlined_call_operand.hbm [shape: f32[2,4,4,8,8], index: 3, kind: output, shape index: {}]  }
   0x1   :  { %1272 = sst [smem:[#allocation15_spill]] %s1260_s1 }
   0x2   :  { %1273 = sst [smem:[#allocation16_spill]] %s1261_s2 }
   0x3   :  { %8 = vsyncpa [#allocation3], 0 }
   0x4   :  { %10 = vsyncpa [#allocation3 + $0x1], 0 }
   0x5   :  { %11 = vsyncpa [#allocation6], 0 }
   0x6   :  { %12 = vsyncpa [#allocation4], 0 }
   0x7   :  { %14 = vsyncpa [#allocation4 + $0x1], 0  ;;  %s965_s12 = smov 0   ;;  %s967_s13 = smov 0  }
   0x8   :  { %s969_s14 = smov 0   ;;  %s971_s15 = smov 0  }
   0x9   :  { %s973_s16 = smov 0   ;;  %s975_s17 = smov 0  }
   0xa   :  { %s977_s18 = smov 0   ;;  %s979_s19 = smov 0  }
   0xb LB: > { %1274 = sst [smem:[#allocation12_spill]] %s905_s12  ;;  %s583_s20 = sadd.s32 4294967295, %s933_s19   ;;  %s933_s19 = sphi %s979_s19, %s20_s19   ;;  %s929_s18 = sphi %s977_s18, %s1304_s18   ;;  %s925_s17 = sphi %s975_s17, %s1303_s17   ;;  %s921_s16 = sphi %s973_s16, %s1302_s16   ;;  %s917_s15 = sphi %s971_s15, %s1301_s15   ;;  %s913_s14 = sphi %s969_s14, %s1300_s14   ;;  %s909_s13 = sphi %s967_s13, %s1299_s13   ;;  %s905_s12 = sphi %s965_s12, %s1298_s12  }
   0xc   : > { %s584_s21 = sadd.s32 4294967294, %s933_s19   ;;  %p72_p0 = scmp.ne.s32.totalorder %s909_s13, %s905_s12 }
   0xd   : > { %p1009_p1 = scmp.eq.s32.totalorder %s583_s20, 0  ;;  %p1013_p2 = scmp.eq.s32.totalorder %s583_s20, 7 }
   0xe   : > { %p150_p3 = scmp.eq.s32.totalorder %s584_s21, 7  ;;  %p585_p5 = scmp.ge.s32.totalorder %s933_s19, 1 }
   0xf   : > { %s1275_s22 = scalar_select %p1009_p1, 1, 0 }
  0x10   : > { %s1276_s23 = scalar_select %p1013_p2, 1, 0 }
  0x11   : > { %p1019_p4 = por %p1009_p1, %p72_p0  ;;  %p1024_p6 = por %p150_p3, %p72_p0 }
  0x12   : > { %p157_p7 = scmp.lt.s32.totalorder %s933_s19, 9  ;;  %s935_s27 = smov [#allocation5]  }
  0x13   : > { %s1277_s24 = scalar_select %p1019_p4, 1, 0 }
  0x14   : > { %s1278_s25 = scalar_select %p1024_p6, 1, 0 }
  0x15   : > { %p1029_p8 = pnand %p585_p5, %p157_p7  ;;  %s169_s28 = sshll.u32 %s935_s27, 4  ;;  %s170_s28 = int_to_ptr.vmem [resolvable:$true] %s169_s28 }
  0x16   : > { %1279 = sst [smem:[#allocation13_spill]] %s1278_s25  ;;  %s936_s30 = smov [#allocation7]  }
  0x17   : > { %s1280_s26 = scalar_select %p1029_p8, 1, 0 }
  0x18   : > { %p652_p9 = pneg %p1029_p8  ;;  %s182_s4 = sshll.u32 %s936_s30, 4  ;;  %s1041_s4 = int_to_ptr.vmem [resolvable:$true] %s182_s4 }
  0x19   : > { %s1282_s1 = sld [smem:[#allocation15_spill]] }
  0x1a   : > { %p1037_p10 = pnand %p652_p9, %p1009_p1 }
  0x1c   : > { %p747_p12 = pneg %p1037_p10 }
  0x1f   : > { %s745_s7 = scalar_lea.hbm %s1282_s1, 256 }
  0x20   : > { %p746_p11 = scmp.ne.s32.totalorder %s1282_s1, %s745_s7  ;;  %p752_p3 = scmp.lt.u32.totalorder %s745_s7, %s1282_s1 }
  0x22   : > { %p748_p13 = pnand %p747_p12, %p746_p11 }
  0x24   : > { %p749_p0 = pneg %p748_p13 }
  0x26   : > { %p754_p5 = pnand %p752_p3, %p749_p0 }
  0x28   : > { %757 = shalt.err (!%p754_p5)
}
  0x29   : > { %s758_s20 = scalar_lea.vmem %s170_s28, 256  ;;  %p766_p1 = scmp.lt.s32.totalorder %s170_s28, %s170_s28 }
  0x2a   : > { %p759_p7 = scmp.ne.s32.totalorder %s170_s28, %s758_s20  ;;  %p767_p4 = scmp.lt.s32.totalorder %s758_s20, %s758_s20 }
  0x2c   : > { %p761_p9 = pnand %p759_p7, %p747_p12  ;;  %p768_p8 = por %p767_p4, %p766_p1 }
  0x2e   : > { %p762_p6 = pneg %p761_p9 }
  0x30   : > { %p769_p2 = pnand %p768_p8, %p762_p6 }
  0x32   : > { %772 = shalt.err (!%p769_p2)
}
  0x33   : > { %s1267_s21 = smov 128   ;;  %s1268_s27 = smov 8  }
  0x34   : > { %655 = dma.hbm_to_vmem [thread:$0]  (!%p1037_p10), %s1282_s1, 256, %s170_s28, [#allocation6], %s1267_s21, %s1267_s21, %s1268_s27  }
  0x35   : > { %s1283_s2 = sld [smem:[#allocation16_spill]] }
  0x3b   : > { %s773_s8 = scalar_lea.hbm %s1283_s2, 256 }
  0x3c   : > { %p774_p1 = scmp.ne.s32.totalorder %s1283_s2, %s773_s8  ;;  %p780_p6 = scmp.lt.u32.totalorder %s773_s8, %s1283_s2 }
  0x3e   : > { %p776_p2 = pnand %p774_p1, %p747_p12 }
  0x40   : > { %p777_p4 = pneg %p776_p2 }
  0x42   : > { %p782_p8 = pnand %p780_p6, %p777_p4 }
  0x44   : > { %785 = shalt.err (!%p782_p8)
}
  0x45   : > { %s786_s28 = scalar_lea.vmem %s1041_s4, 256  ;;  %p794_p3 = scmp.lt.s32.totalorder %s1041_s4, %s1041_s4 }
  0x46   : > { %p787_p11 = scmp.ne.s32.totalorder %s1041_s4, %s786_s28  ;;  %p795_p5 = scmp.lt.s32.totalorder %s786_s28, %s786_s28 }
  0x48   : > { %p789_p13 = pnand %p787_p11, %p747_p12  ;;  %p796_p7 = por %p795_p5, %p794_p3 }
  0x4a   : > { %p790_p0 = pneg %p789_p13 }
  0x4c   : > { %p797_p9 = pnand %p796_p7, %p790_p0 }
  0x4e   : > { %800 = shalt.err (!%p797_p9)
}
  0x4f   : > { %658 = dma.hbm_to_vmem [thread:$0]  (!%p1037_p10), %s1283_s2, 256, %s1041_s4, [#allocation6], %s1267_s21, %s1267_s21, %s1268_s27  }
  0x50   : > { %s42_s29 = sadd.s32 1, %s925_s17  ;;  %s46_s6 = sadd.s32 1, %s929_s18 }
  0x51   : > { %p44_p12 = scmp.ge.s32.totalorder %s42_s29, 4  ;;  %s59_s7 = sadd.s32 1, %s913_s14 }
  0x52   : > { %p66_p1 = scmp.ne.s32.totalorder %s913_s14, %s909_s13  ;;  %p67_p2 = scmp.eq.s32.totalorder %s933_s19, 0 }
  0x53   : > { %s1306_s29 = smov (%p44_p12, %s42_s29), 0  ;;  %s1308_s6 = smov (!%p44_p12, %s46_s6), %s929_s18 }
  0x54   : > { %1284 = sst [smem:[#allocation14_spill]] %s1306_s29  ;;  %s51_s8 = ssub.s32 %s925_s17, %s1306_s29 }
  0x55   : > { %p1107_p4 = por %p67_p2, %p66_p1  ;;  %p48_p10 = scmp.ge.s32.totalorder %s1308_s6, 2 }
  0x56   : > { %p1286_p6 = scmp.ne.s32.totalorder %s1276_s23, 0  ;;  %p669_p11 = scmp.lt.s32.totalorder %s933_s19, 8 }
  0x57   : > { %s196_s10 = sand.u32 1, %s913_s14   ;;  %s1310_s6 = smov (%p48_p10, %s1308_s6), 0 }
  0x58   : > { %p1113_p8 = por %p1286_p6, %p66_p1  ;;  %s589_s11 = sshll.u32 %s196_s10, 4 }
  0x59   : > { %s50_s20 = ssub.s32 %s929_s18, %s1310_s6  ;;  %s590_s30 = sshll.u32 %s925_s17, 1 }
  0x5a   : > { %s52_s28 = sor.u32 %s51_s8, %s50_s20  ;;  %s591_s5 = sshll.u32 %s929_s18, 3 }
  0x5b   : > { %p57_p13 = scmp.eq.s32.totalorder %s52_s28, 0  ;;  %s209_s21 = sadd.s32 %s591_s5, %s590_s30 }
  0x5c   : > { %s200_s27 = scalar_lea.vmem [#allocation2], %s589_s11  ;;  %s592_s2 = sshll.u32 %s209_s21, 7 }
  0x5d   : > { %s212_s23 = sshll.u32 %s200_s27, 4  ;;  %s1133_s12 = scalar_lea.hbm %s1259_s0, %s592_s2  ;;  %s1128_s23 = int_to_ptr.vmem [resolvable:$true] %s212_s23 }
  0x5e   : > { %s1126_s1 = scalar_select %p57_p13, %s913_s14, %s59_s7  }
  0x5f   : > { %p1139_p0 = pnand %p669_p11, %p1107_p4  ;;  %s1143_s21 = scalar_lea.sflag [#allocation3], %s196_s10 }
  0x60   : > { %s801_s27 = scalar_lea.hbm %s1133_s12, 256  ;;  %s806_s29 = scalar_lea.hbm %s1259_s0, 2048 }
  0x61   : > { %p802_p3 = scmp.ne.s32.totalorder %s1133_s12, %s801_s27  ;;  %p803_p5 = pneg %p1139_p0 }
  0x62   : > { %p807_p12 = scmp.lt.u32.totalorder %s1133_s12, %s1259_s0  ;;  %p808_p1 = scmp.lt.u32.totalorder %s806_s29, %s801_s27 }
  0x63   : > { %p804_p7 = pnand %p803_p5, %p802_p3  ;;  %p810_p4 = scmp.lt.u32.totalorder %s801_s27, %s1133_s12 }
  0x64   : > { %p809_p2 = por %p808_p1, %p807_p12 }
  0x65   : > { %p805_p9 = pneg %p804_p7 }
  0x66   : > { %p811_p10 = por %p810_p4, %p809_p2 }
  0x68   : > { %p812_p6 = pnand %p811_p10, %p805_p9 }
  0x6a   : > { %815 = shalt.err (!%p812_p6)
}
  0x6b   : > { %s816_s10 = scalar_lea.vmem %s1128_s23, 256  ;;  %s939_s11 = smov [#allocation2]  }
  0x6c   : > { %p817_p11 = scmp.ne.s32.totalorder %s1128_s23, %s816_s10  ;;  %s821_s20 = sshll.u32 %s939_s11, 4  ;;  %s822_s20 = int_to_ptr.vmem [resolvable:$false] %s821_s20 }
  0x6d   : > { %s823_s28 = scalar_lea.vmem %s822_s20, 512  ;;  %p824_p7 = scmp.lt.s32.totalorder %s1128_s23, %s822_s20 }
  0x6e   : > { %p819_p13 = pnand %p817_p11, %p803_p5  ;;  %p825_p12 = scmp.lt.s32.totalorder %s823_s28, %s816_s10 }
  0x70   : > { %p820_p3 = pneg %p819_p13  ;;  %p826_p1 = por %p825_p12, %p824_p7 }
  0x72   : > { %p827_p2 = pnand %p826_p1, %p820_p3 }
  0x74   : > { %830 = shalt.err (!%p827_p2)
}
  0x75   : > { %s1289_s30 = smov 8   ;;  %s1290_s5 = smov 128  }
  0x76   : > { %662 = dma.hbm_to_vmem [thread:$0]  (!%p1139_p0), %s1133_s12, 256, %s1128_s23, %s1143_s21, %s1290_s5, %s1290_s5, %s1289_s30  }
  0x77   : > { %p1291_p5 = scmp.ne.s32.totalorder %s1280_s26, 0 }
  0x78   : > { %s1177_s27 = sand.u32 (!%p1291_p5), 1, %s909_s13   ;;  %p1292_p9 = scmp.ne.s32.totalorder (!%p1291_p5), %s1277_s24, 0 }
  0x79   : > { %224 = sbr.rel (%p1291_p5) target bundleno = 706 (0x2c2), region = 32  ;;  %s594_s2 = sshll.u32 (!%p1291_p5), %s1177_s27, 4 }
  0x7a   : > { %s227_s25 = scalar_lea.sflag (!%p1291_p5), [#allocation3], %s1177_s27  ;;  %s230_s29 = scalar_lea.vmem (!%p1291_p5), [#allocation2], %s594_s2 }
  0x80   : > { %892 = dma.done.wait (%p1292_p9), %s227_s25, 256  }
  0x81   : > { %894 = vsyncadd (%p1292_p9), %s227_s25, 4294967040  ;;  %p1293_p4 = scmp.ne.s32.totalorder %s1275_s22, 0 }
  0x83   : > { %896 = dma.done.wait (%p1293_p4), [#allocation6], 512  }
  0x84   : > { %898 = vsyncadd (%p1293_p4), [#allocation6], 4294966784  ;;  %vm266_vm0 = vcmask 130048   ;;  %v264_v0 = vld [vmem:[#allocation7] sm:$0xff]  ;;  %v265_v1 = vld [vmem:[#allocation7 + $0x8] sm:$0xff]  ;;  %s597_s12 = sshll.u32 %s1177_s27, 5 }
  0x85   : > { %v262_v2 = vld [vmem:[%s230_s29] sm:$0xff]  ;;  %v632_v3 = vpack.c.bf16 %v265_v1, %v264_v0  ;;  %v263_v4 = vld [vmem:[%s230_s29 + $0x8] sm:$0xff]  ;;  %vm431_vm1 = vcmask 64512   ;;  %s260_s22 = scalar_lea.vmem [#allocation8], %s597_s12  ;;  %s940_s24 = smov 120  }
  0x86   : > { %622 = vmatprep.mubr.msk.f32.mxu0 %vm266_vm0, %v262_v2  ;;  %v348_v5 = vld [vmem:[#allocation5] sm:$0xff]  ;;  %v349_v9 = vld [vmem:[#allocation5 + $0x8] sm:$0xff]  ;;  %s606_s26 = sshll.u32 %s921_s16, 4  ;;  %s464_s8 = sshll.u32 %s260_s22, 4  ;;  %s1198_s8 = int_to_ptr.vmem [resolvable:$true] %s464_s8 }
  0x87   : > { %633 = vmatprep.subr.bf16.mxu0 %v632_v3  ;;  %629 = vmatprep.mubr.msk.f32.mxu1 %vm266_vm0, %v348_v5  ;;  %s461_s23 = sadd.s32 %s917_s15, %s606_s26  ;;  %s448_s16 = scalar_lea.sflag [#allocation4], %s1177_s27 }
  0x88   : > { %635 = vmatpush3.bf16.msra.mxu0 %v632_v3  ;;  %s607_s21 = sshll.u32 %s461_s23, 7  ;;  %s831_s15 = scalar_lea.vmem %s1198_s8, 512 }
  0x89   : > { %s1204_s10 = scalar_lea.hbm %s1262_s3, %s607_s21  ;;  %p832_p0 = scmp.ne.s32.totalorder %s1198_s8, %s831_s15 }
  0x8a   : > { %s941_s11 = smov [#allocation8]  }
  0x8b   : > { %623 = vmatmul.mubr.msk.f32.vlgmr.msra.gmra.mrb[0].mxu0 %vm266_vm0, %v263_v4  ;;  %p833_p10 = pnand %p832_p0, %p1113_p8  ;;  %s835_s20 = sshll.u32 %s941_s11, 4  ;;  %s836_s20 = int_to_ptr.vmem [resolvable:$false] %s835_s20 }
  0x8c   : > { %s837_s28 = scalar_lea.vmem %s836_s20, 1024  ;;  %p838_p11 = scmp.lt.s32.totalorder %s1198_s8, %s836_s20 }
  0x8d   : > { %p834_p6 = pneg %p833_p10  ;;  %p839_p13 = scmp.lt.s32.totalorder %s837_s28, %s831_s15 }
  0x8f   : > { %p840_p3 = por %p839_p13, %p838_p11 }
  0x91   : > { %p841_p7 = pnand %p840_p3, %p834_p6 }
 0x15e   : > { %v624_v6 = vpop.f32.mrb[0].mxu0 }
 0x15f   : > { %v339_v7 = vpop.f32.mrb[1].mxu0 }
 0x160   : > { %v636_v8 = vpack.c.bf16 %v624_v6, %v339_v7 }
 0x162   : > { %637 = vmatprep.subr.bf16.mxu1 %v636_v8 }
 0x163   : > { %639 = vmatpush3.bf16.msra.mxu1 %v636_v8 }
 0x166   : > { %630 = vmatmul.mubr.msk.f32.vlgmr.msra.gmra.mrb[0].mxu1 %vm266_vm0, %v349_v9 }
 0x239   : > { %v631_v10 = vpop.f32.mrb[0].mxu1 }
 0x23a   : > { %603 = vst.msk [vmem:[%s260_s22 + $0x10] sm:$0xff] %vm431_vm1, %v631_v10  ;;  %v422_v11 = vpop.f32.mrb[1].mxu1 }
 0x23b   : > { %432 = vst.msk [vmem:[%s260_s22] sm:$0xff] %vm431_vm1, %v422_v11  ;;  %434 = vrot.lane.b32.xlu0 %v422_v11, %s940_s24 }
 0x23f   : > { %442 = vrot.lane.b32.xlu0 %v631_v10, %s940_s24 }
 0x2ad   : > { %v435_v12 = vpop.permute.xlu0 %434 }
 0x2ae   : > { %602 = vst.msk [vmem:[%s260_s22 + $0x8] sm:$0xff] %vm431_vm1, %v435_v12 }
 0x2b1   : > { %v443_v13 = vpop.permute.xlu0 %442 }
 0x2b2   : > { %604 = vst.msk [vmem:[%s260_s22 + $0x18] sm:$0xff] %vm431_vm1, %v443_v13 }
 0x2b3   : > { %844 = shalt.err (!%p841_p7)
}
 0x2b4   : > { %s845_s30 = scalar_lea.hbm %s1204_s10, 512  ;;  %s849_s25 = scalar_lea.hbm %s1262_s3, 4096 }
 0x2b5   : > { %p846_p12 = scmp.ne.s32.totalorder %s1204_s10, %s845_s30  ;;  %p850_p5 = scmp.lt.u32.totalorder %s1204_s10, %s1262_s3 }
 0x2b6   : > { %p851_p9 = scmp.lt.u32.totalorder %s849_s25, %s845_s30  ;;  %p853_p0 = scmp.lt.u32.totalorder %s845_s30, %s1204_s10 }
 0x2b7   : > { %p847_p1 = pnand %p846_p12, %p1113_p8 }
 0x2b8   : > { %p852_p4 = por %p851_p9, %p850_p5 }
 0x2b9   : > { %p848_p2 = pneg %p847_p1 }
 0x2ba   : > { %p854_p10 = por %p853_p0, %p852_p4 }
 0x2bc   : > { %p855_p6 = pnand %p854_p10, %p848_p2 }
 0x2be   : > { %858 = shalt.err (!%p855_p6)
}
 0x2bf   : > { %s942_s22 = smov 128   ;;  %s943_s24 = smov 512  }
 0x2c0   : > { %s944_s26 = smov 8  }
 0x2c1   : > { %650 = dma.vmem_to_hbm [thread:$0]  (%p1113_p8), %s1198_s8, 512, %s1204_s10, %s448_s16, %s942_s22, %s943_s24, %s944_s26  }
 0x2c2 PF: > { %s1294_s23 = sld [smem:[#allocation12_spill]]  ;;  %s1295_s21 = sld [smem:[#allocation13_spill]] }
 0x2c3   : > { %p672_p11 = scmp.ge.s32.totalorder %s933_s19, 2 }
 0x2c8   : > { %s479_s7 = sand.u32 1, %s1294_s23   ;;  %p1296_p13 = scmp.ne.s32.totalorder %s1295_s21, 0 }
 0x2c9   : > { %s480_s9 = scalar_lea.sflag [#allocation4], %s479_s7 }
 0x2ca   : > { %p664_p3 = pnand %p672_p11, %p1296_p13 }
 0x2cc   : > { %900 = dma.done.wait (!%p664_p3), %s480_s9, 512  }
 0x2cd   : > { %902 = vsyncadd (!%p664_p3), %s480_s9, 4294966784  ;;  %s20_s19 = sadd.s32 1, %s933_s19   ;;  %s1297_s4 = sld [smem:[#allocation14_spill]] }
 0x2ce   : > { %p17_p7 = scmp.ge.s32.totalorder %s20_s19, 10   ;;  %s1298_s12 = smov %s909_s13 }
 0x2cf   : > { %s1299_s13 = smov %s913_s14  ;;  %s1300_s14 = smov %s1126_s1 }
 0x2d0   : > { %s1301_s15 = smov %s925_s17  ;;  %s1302_s16 = smov %s929_s18 }
 0x2d1   : > { %s1304_s18 = smov %s1310_s6  ;;  %19 = sbr.rel (!%p17_p7) target bundleno = 11 (0xb), region = 88 }
 0x2d3   : > { %s1303_s17 = smov %s1297_s4 }
 0x2d8   :  { %485 = vsyncpa [#allocation3], 1 }
 0x2d9   :  { %487 = vsyncpa [#allocation3 + $0x1], 1 }
 0x2da   :  { %488 = vsyncpa [#allocation6], 1 }
 0x2db   :  { %489 = vsyncpa [#allocation4], 1 }
 0x2dc   :  { %491 = vsyncpa [#allocation4 + $0x1], 1 }

</bundles_post_ra>
